<compile_context>
chip_gen: v5e
topology: v5e:2x2
jax: 0.10.0
libtpu: 0.0.40
codegen_flags: <defaults>
</compile_context>

<pallas_src>
import functools

import jax
import jax.numpy as jnp
from jax.experimental import pallas as pl
from jax.experimental.pallas import tpu as pltpu


# ----------------------------------------------------------------------------
# Fused matmul kernel
# ----------------------------------------------------------------------------
def _mm_kernel(x_ref, w_ref, s_ref, t_ref, o_ref, *, relu):
    k = pl.program_id(2)

    @pl.when(k == 0)
    def _():
        o_ref[...] = jnp.zeros_like(o_ref)

    # Output tile doubles as the f32 accumulator (o_ref is f32 and its block
    # index is invariant across the k axis).
    o_ref[...] += jnp.dot(x_ref[...], w_ref[...],
                          preferred_element_type=jnp.float32)

    @pl.when(k == pl.num_programs(2) - 1)
    def _():
        y = o_ref[...] * s_ref[...] + t_ref[...]
        if relu:
            y = jnp.maximum(y, 0.0)
        o_ref[...] = y


def _choose_tile(dim, preferred, align):
    """Largest tile <= preferred dividing dim and a multiple of align, else the
    full dim (full-extent blocks are always legal)."""
    if dim <= preferred:
        return dim
    for t in range(preferred, 0, -align):
        if dim % t == 0:
            return t
    return dim


def matmul_bias_scale_act(x, w, bias=None, scale=None, shift=None, relu=False):
    """y = maybe_relu((x @ w + bias) * scale + shift), fused in one Pallas call."""
    M, K = x.shape
    K2, N = w.shape
    assert K == K2

    scale_arr = jnp.broadcast_to(
        jnp.asarray(1.0 if scale is None else scale, jnp.float32), (N,))
    shift_arr = jnp.broadcast_to(
        jnp.asarray(0.0 if shift is None else shift, jnp.float32), (N,))
    if bias is not None:
        # (x@w + b)*s + t  ==  (x@w)*s + (b*s + t)
        shift_arr = shift_arr + jnp.asarray(bias, jnp.float32) * scale_arr

    # Lane-dense output: pad tiny N (e.g. the 2-channel pos conv) up to a
    # multiple of 128 so stores are unmasked; slice the valid columns after.
    Np = N if N % 128 == 0 else ((N + 127) // 128) * 128
    if Np != N:
        w = jnp.pad(w, ((0, 0), (0, Np - N)))
        scale_arr = jnp.pad(scale_arr, (0, Np - N))
        shift_arr = jnp.pad(shift_arr, (0, Np - N))

    xb = x.astype(jnp.bfloat16)          # bf16 MXU inputs, f32 accumulation
    wb = w.astype(jnp.bfloat16)
    s2 = scale_arr.reshape(1, Np)
    t2 = shift_arr.reshape(1, Np)

    tm = _choose_tile(M, 256, 16)
    tn = _choose_tile(Np, 512, 128)
    tk = _choose_tile(K, 512, 128)

    out = pl.pallas_call(
        functools.partial(_mm_kernel, relu=relu),
        out_shape=jax.ShapeDtypeStruct((M, Np), jnp.float32),
        grid_spec=pltpu.PrefetchScalarGridSpec(
            num_scalar_prefetch=0,
            grid=(M // tm, Np // tn, K // tk),
            in_specs=[
                pl.BlockSpec((tm, tk), lambda i, j, k: (i, k)),
                pl.BlockSpec((tk, tn), lambda i, j, k: (k, j)),
                pl.BlockSpec((1, tn), lambda i, j, k: (0, j)),
                pl.BlockSpec((1, tn), lambda i, j, k: (0, j)),
            ],
            out_specs=pl.BlockSpec((tm, tn), lambda i, j, k: (i, j)),
        ),
        compiler_params=pltpu.CompilerParams(
            dimension_semantics=("parallel", "parallel", "arbitrary"),
            vmem_limit_bytes=48 * 1024 * 1024,   # within v7x's 64 MiB physical VMEM
        ),
    )(xb, wb, s2, t2)
    return out[:, :N] if Np != N else out


# ----------------------------------------------------------------------------
# Attention kernel: one batch per grid step, all heads at once, lane-dense out.
# The 1/sqrt(dim_head) scale is already folded into the to_q matmul.
# TODO(synk): for production image sizes (large n) convert to a kv-tiled
# online-softmax (flash) form so the (heads, n, n) score tensor never
# materializes; at realistic n it would not fit v7x's 64 MiB VMEM.
# ----------------------------------------------------------------------------
def _attn_kernel(q_ref, k_ref, v_ref, o_ref, *, heads):
    q = q_ref[0]          # (heads, n, d) bf16
    k = k_ref[0]
    v = v_ref[0]
    dots = jnp.einsum("hnd,hmd->hnm", q, k,
                      preferred_element_type=jnp.float32)
    m = jnp.max(dots, axis=-1, keepdims=True)
    p = jnp.exp(dots - m)
    l = jnp.sum(p, axis=-1, keepdims=True)
    p = p * pl.reciprocal(l, approx=True)
    o = jnp.einsum("hnm,hmd->hnd", p.astype(v.dtype), v,
                   preferred_element_type=jnp.float32)
    # 'h n d -> n (h d)': lane-dense (n, heads*d) write-back, no masked stores.
    o_ref[0] = jnp.concatenate([o[h] for h in range(heads)],
                               axis=-1).astype(o_ref.dtype)


def mha_attention(q, k, v):
    """q, k, v: (B, heads, n, d) -> (B, n, heads*d) = softmax(q k^T) @ v."""
    B, heads, n, d = q.shape
    qb = q.astype(jnp.bfloat16)
    kb = k.astype(jnp.bfloat16)
    vb = v.astype(jnp.bfloat16)
    return pl.pallas_call(
        functools.partial(_attn_kernel, heads=heads),
        out_shape=jax.ShapeDtypeStruct((B, n, heads * d), jnp.float32),
        grid_spec=pltpu.PrefetchScalarGridSpec(
            num_scalar_prefetch=0,
            grid=(B,),
            in_specs=[pl.BlockSpec((1, heads, n, d),
                                   lambda b: (b, 0, 0, 0))] * 3,
            out_specs=pl.BlockSpec((1, n, heads * d), lambda b: (b, 0, 0)),
        ),
        compiler_params=pltpu.CompilerParams(
            dimension_semantics=("parallel",)),
    )(qb, kb, vb)


# ----------------------------------------------------------------------------
# Pure-JAX reference implementations of the same primitives (for checking)
# ----------------------------------------------------------------------------
def matmul_ref(x, w, bias=None, scale=None, shift=None, relu=False):
    y = jnp.dot(x.astype(jnp.float32), w.astype(jnp.float32),
                precision=jax.lax.Precision.HIGHEST)
    if bias is not None:
        y = y + bias
    if scale is not None:
        y = y * scale
    if shift is not None:
        y = y + shift
    if relu:
        y = jnp.maximum(y, 0.0)
    return y


def attn_ref(q, k, v):
    # q, k, v: (B, heads, n, d) -> (B, n, heads*d)
    B, h, n, d = q.shape
    dots = jnp.einsum("bhnd,bhmd->bhnm", q, k,
                      precision=jax.lax.Precision.HIGHEST)
    p = jax.nn.softmax(dots, axis=-1)
    o = jnp.einsum("bhnm,bhmd->bhnd", p, v,
                   precision=jax.lax.Precision.HIGHEST)
    return jnp.transpose(o, (0, 2, 1, 3)).reshape(B, n, h * d)


# ----------------------------------------------------------------------------
# Glue: im2col, einops-style rearranges, BN folding
# ----------------------------------------------------------------------------
# TODO(synk): replace the 9x im2col materialization with a tap-folded K grid
# axis (index_map over the 9 (kh,kw) taps of the padded NHWC input) to cut conv
# activation HBM traffic ~9x; matters most on v5e.
def conv3x3_im2col(x_nhwc):
    B, H, W, C = x_nhwc.shape
    xp = jnp.pad(x_nhwc, ((0, 0), (1, 1), (1, 1), (0, 0)))
    cols = [xp[:, kh:kh + H, kw:kw + W, :] for kh in range(3) for kw in range(3)]
    patches = jnp.concatenate(cols, axis=-1)      # (B,H,W,9C), feature order (kh,kw,c)
    return patches.reshape(B * H * W, 9 * C)


def conv_w_to_mat(w):  # torch (Cout,Cin,kh,kw) -> (kh*kw*Cin, Cout)
    Cout, Cin, kh, kw = w.shape
    return jnp.transpose(w, (2, 3, 1, 0)).reshape(kh * kw * Cin, Cout)


def bn_fold(bn, eps=1e-3):
    gamma, beta, mean, var = bn
    scale = gamma / jnp.sqrt(var + eps)
    shift = beta - mean * scale
    return scale, shift


def to_patches(x_nchw, p1, p2):
    # 'b c (h p1) (w p2) -> b (h w) (p1 p2 c)'
    B, C, H, W = x_nchw.shape
    h, w = H // p1, W // p2
    x = x_nchw.reshape(B, C, h, p1, w, p2)
    x = jnp.transpose(x, (0, 2, 4, 3, 5, 1))       # b h w p1 p2 c
    return x.reshape(B, h * w, p1 * p2 * C)


def from_patches(x, p1, p2, h, w, C):
    # 'b (h w) (p1 p2 c) -> b c (h p1) (w p2)'
    B = x.shape[0]
    x = x.reshape(B, h, w, p1, p2, C)
    x = jnp.transpose(x, (0, 5, 1, 3, 2, 4))       # b c h p1 w p2
    return x.reshape(B, C, h * p1, w * p2)


# ----------------------------------------------------------------------------
# Combine_Attention forward (parameterized by the matmul / attention impl)
# ----------------------------------------------------------------------------
def combine_attention_forward(params, x_in, x_prev, matmul, attn,
                              fuse_out_normal=False):
    B, C, H, W = x_in.shape
    p1, p2 = 3, 10
    h, w = H // p1, W // p2
    n = h * w
    dim = 1024
    heads, dim_head = 8, 64

    # ---- pos_conv: conv1x1(256->128)+BN+ReLU, conv3x3(128->2), softmax(dim=1) ----
    comb = jnp.concatenate([x_in, x_prev], axis=1)                       # (B,256,H,W)
    comb_flat = jnp.transpose(comb, (0, 2, 3, 1)).reshape(B * H * W, 2 * C)
    s, t = bn_fold(params["pos_bn"])
    y = matmul(comb_flat, conv_w_to_mat(params["pos_c1_w"]),
               bias=params["pos_c1_b"], scale=s, shift=t, relu=True)
    y = y.reshape(B, H, W, C)
    y2 = matmul(conv3x3_im2col(y), conv_w_to_mat(params["pos_c2_w"]),
                bias=params["pos_c2_b"])                                  # (B*H*W, 2)
    comb_pos = jax.nn.softmax(y2.reshape(B, H, W, 2), axis=-1)            # softmax over channels
    comb_pos = jnp.transpose(comb_pos, (0, 3, 1, 2))                      # (B,2,H,W)
    pos_in_img = comb_pos[:, 0:1]
    pos_prev_img = comb_pos[:, 1:2]

    pos_in = matmul(to_patches(pos_in_img, p1, p2).reshape(B * n, p1 * p2),
                    params["pos_lin1_w"].T, bias=params["pos_lin1_b"]).reshape(B, n, dim)
    pos_prev = matmul(to_patches(pos_prev_img, p1, p2).reshape(B * n, p1 * p2),
                      params["pos_lin2_w"].T, bias=params["pos_lin2_b"]).reshape(B, n, dim)

    # ---- conv1 / conv2 : conv3x3(128->128)+BN+ReLU ----
    def conv_block(x_img, wk, bk, bnk):
        x_nhwc = jnp.transpose(x_img, (0, 2, 3, 1))
        sc, sh = bn_fold(params[bnk])
        out = matmul(conv3x3_im2col(x_nhwc), conv_w_to_mat(params[wk]),
                     bias=params[bk], scale=sc, shift=sh, relu=True)
        return jnp.transpose(out.reshape(B, H, W, C), (0, 3, 1, 2))

    x1 = conv_block(x_in, "conv1_w", "conv1_b", "bn1")
    x2 = conv_block(x_prev, "conv2_w", "conv2_b", "bn2")

    # ---- patch embeddings ----
    xe = matmul(to_patches(x1, p1, p2).reshape(B * n, p1 * p2 * C),
                params["emb1_w"].T, bias=params["emb1_b"]).reshape(B, n, dim)
    xpe = matmul(to_patches(x2, p1, p2).reshape(B * n, p1 * p2 * C),
                 params["emb2_w"].T, bias=params["emb2_b"]).reshape(B, n, dim)

    # NOTE: the :n+1 slice mirrors the PyTorch module; it clamps to n since the
    # table has length n (no cls token).
    xe = xe + params["pos_embedding"][:, :n + 1] + pos_in
    xpe = xpe + params["pos_embedding"][:, :n + 1] + pos_prev

    # ---- cross attention (Attention module, dropout p=0) ----
    kv = matmul(xpe.reshape(B * n, dim), params["to_kv_w"].T)             # (B*n, 1024)
    # 1/sqrt(dim_head) folded into the to_q matmul epilogue (free scale slot).
    q = matmul(xe.reshape(B * n, dim), params["to_q_w"].T,
               scale=dim_head ** -0.5)                                    # (B*n, 512)
    k_, v_ = kv[:, :heads * dim_head], kv[:, heads * dim_head:]

    def split_heads(tns):  # 'b n (h d) -> b h n d'
        return jnp.transpose(tns.reshape(B, n, heads, dim_head), (0, 2, 1, 3))

    o = attn(split_heads(q), split_heads(k_), split_heads(v_))            # (B, n, 512)
    o_flat = o.reshape(B * n, heads * dim_head)

    # ---- to_out + to_normal : two Linears with no nonlinearity in between ----
    if fuse_out_normal:
        # Exact composition: one 512 -> 3840 matmul (2.3x fewer FLOPs, one
        # fewer HBM round-trip for the (B*n, 1024) intermediate).
        w_f = jnp.dot(params["to_out_w"].T, params["to_normal_w"].T,
                      precision=jax.lax.Precision.HIGHEST)                # (512, 3840)
        b_f = jnp.dot(params["to_out_b"], params["to_normal_w"].T,
                      precision=jax.lax.Precision.HIGHEST) + params["to_normal_b"]
        nrm = matmul(o_flat, w_f, bias=b_f)
    else:
        att_out = matmul(o_flat, params["to_out_w"].T, bias=params["to_out_b"])
        nrm = matmul(att_out, params["to_normal_w"].T, bias=params["to_normal_b"])

    att_img = from_patches(nrm.reshape(B, n, p1 * p2 * C), p1, p2, h, w, C)  # (B,128,H,W)

    # ---- final_conv: conv1x1(256->128)+BN+ReLU ----
    comb2 = jnp.concatenate([x_in, att_img], axis=1)
    comb2_flat = jnp.transpose(comb2, (0, 2, 3, 1)).reshape(B * H * W, 2 * C)
    s, t = bn_fold(params["final_bn"])
    f = matmul(comb2_flat, conv_w_to_mat(params["final_w"]),
               bias=params["final_b"], scale=s, shift=t, relu=True)
    return jnp.transpose(f.reshape(B, H, W, C), (0, 3, 1, 2))


# ----------------------------------------------------------------------------
# Deterministic parameter init (torch layouts: Linear (out,in), Conv (Cout,Cin,kh,kw))
# ----------------------------------------------------------------------------
def init_params(key, image_height, image_width):
    C, dim = 128, 1024
    p1, p2 = 3, 10
    n = (image_height // p1) * (image_width // p2)
    patch_dim = C * p1 * p2
    ks = iter(jax.random.split(key, 64))

    def w(shape, s=0.02):
        return jax.random.normal(next(ks), shape, jnp.float32) * s

    def bn(c):
        gamma = 1.0 + 0.05 * jax.random.normal(next(ks), (c,), jnp.float32)
        beta = 0.05 * jax.random.normal(next(ks), (c,), jnp.float32)
        mean = 0.05 * jax.random.normal(next(ks), (c,), jnp.float32)
        var = 1.0 + 0.05 * jax.random.uniform(next(ks), (c,), jnp.float32)
        return (gamma, beta, mean, var)

    return {
        "conv1_w": w((C, C, 3, 3)), "conv1_b": w((C,)), "bn1": bn(C),
        "conv2_w": w((C, C, 3, 3)), "conv2_b": w((C,)), "bn2": bn(C),
        "pos_c1_w": w((C, 2 * C, 1, 1)), "pos_c1_b": w((C,)), "pos_bn": bn(C),
        "pos_c2_w": w((2, C, 3, 3)), "pos_c2_b": w((2,)),
        "pos_lin1_w": w((dim, p1 * p2)), "pos_lin1_b": w((dim,)),
        "pos_lin2_w": w((dim, p1 * p2)), "pos_lin2_b": w((dim,)),
        "emb1_w": w((dim, patch_dim)), "emb1_b": w((dim,)),
        "emb2_w": w((dim, patch_dim)), "emb2_b": w((dim,)),
        "pos_embedding": w((1, n, dim), 1.0),
        "to_kv_w": w((2 * 512, dim)), "to_q_w": w((512, dim)),
        "to_out_w": w((dim, 512)), "to_out_b": w((dim,)),
        "to_normal_w": w((patch_dim, dim)), "to_normal_b": w((patch_dim,)),
        "final_w": w((C, 2 * C, 1, 1)), "final_b": w((C,)), "final_bn": bn(C),
    }


# ----------------------------------------------------------------------------
if __name__ == "__main__":
    key = jax.random.PRNGKey(0)
    kp, kx, kxp = jax.random.split(key, 3)

    # image must be divisible by patch (3, 10); keep it small.
    image_height, image_width = 6, 20
    B = 2
    params = init_params(kp, image_height, image_width)
    x_in = jax.random.normal(kx, (B, 128, image_height, image_width), jnp.float32)
    x_prev = jax.random.normal(kxp, (B, 128, image_height, image_width), jnp.float32)

    out = combine_attention_forward(params, x_in, x_prev,
                                    matmul_bias_scale_act, mha_attention,
                                    fuse_out_normal=True)
    out = jax.block_until_ready(out)
    assert out.shape == (B, 128, image_height, image_width)

    ref = combine_attention_forward(params, x_in, x_prev, matmul_ref, attn_ref,
                                    fuse_out_normal=False)
    ref = jax.block_until_ready(ref)
    err = float(jnp.max(jnp.abs(out - ref)))
    # bf16 MXU inputs (f32 accumulation) -> slightly looser tolerance than pure f32.
    assert err < 5e-2, f"max abs err {err}"

    print("KERNEL_OK")
</pallas_src>

<mosaic_0001>
module attributes {stable_mosaic.version = 11 : i64} {
  func.func @_mm_kernel(%arg0: i32, %arg1: i32, %arg2: i32, %arg3: memref<240x256xbf16, #tpu.memory_space<vmem>>, %arg4: memref<256x128xbf16, #tpu.memory_space<vmem>>, %arg5: memref<1x128xf32, #tpu.memory_space<vmem>>, %arg6: memref<1x128xf32, #tpu.memory_space<vmem>>, %arg7: memref<240x128xf32, #tpu.memory_space<vmem>>) attributes {dimension_semantics = [#tpu.dimension_semantics<parallel>, #tpu.dimension_semantics<parallel>, #tpu.dimension_semantics<arbitrary>], iteration_bounds = array<i64: 1, 1, 1>, scalar_prefetch = 0 : i64, scratch_operands = 0 : i64, tpu.core_type = #tpu.core_type<tc>, window_params = [{transform_indices = @transform_0, window_bounds = array<i64: 240, 256>}, {transform_indices = @transform_1, window_bounds = array<i64: 256, 128>}, {transform_indices = @transform_2, window_bounds = array<i64: 1, 128>}, {transform_indices = @transform_3, window_bounds = array<i64: 1, 128>}, {transform_indices = @transform_4, window_bounds = array<i64: 240, 128>}]} {
    %c0_i32 = arith.constant 0 : i32
    %0 = arith.cmpi eq, %arg2, %c0_i32 : i32
    %1 = arith.extui %0 : i1 to i32
    %c0_i32_0 = arith.constant 0 : i32
    %2 = arith.cmpi ne, %1, %c0_i32_0 : i32
    scf.if %2 {
      %cst_10 = arith.constant 0.000000e+00 : f32
      %12 = vector.broadcast %cst_10 : f32 to vector<240x128xf32>
      %c0_11 = arith.constant 0 : index
      %c0_12 = arith.constant 0 : index
      %13 = vector.load %arg7[%c0_11, %c0_12] : memref<240x128xf32, #tpu.memory_space<vmem>>, vector<240x128xf32>
      tpu.vector_store %arg7[%c0_11, %c0_12], %12 {strides = array<i32>} : memref<240x128xf32, #tpu.memory_space<vmem>>, vector<240x128xf32>,
    } else {
    }
    %c0 = arith.constant 0 : index
    %c0_1 = arith.constant 0 : index
    %3 = vector.load %arg7[%c0, %c0_1] : memref<240x128xf32, #tpu.memory_space<vmem>>, vector<240x128xf32>
    %c0_2 = arith.constant 0 : index
    %c0_3 = arith.constant 0 : index
    %4 = vector.load %arg3[%c0_2, %c0_3] : memref<240x256xbf16, #tpu.memory_space<vmem>>, vector<240x256xbf16>
    %c0_4 = arith.constant 0 : index
    %c0_5 = arith.constant 0 : index
    %5 = vector.load %arg4[%c0_4, %c0_5] : memref<256x128xbf16, #tpu.memory_space<vmem>>, vector<256x128xbf16>
    %cst = arith.constant dense<0.000000e+00> : vector<240x128xf32>
    %6 = tpu.matmul %4, %5, %cst {dimension_numbers = #tpu.dot_dimension_numbers<[1], [0], [0], [1], [0, 0, 1, 1], [], []>} : vector<240x256xbf16>, vector<256x128xbf16>, vector<240x128xf32> -> vector<240x128xf32>
    %7 = arith.addf %3, %6 : vector<240x128xf32>
    %c0_6 = arith.constant 0 : index
    %c0_7 = arith.constant 0 : index
    %8 = vector.load %arg7[%c0_6, %c0_7] : memref<240x128xf32, #tpu.memory_space<vmem>>, vector<240x128xf32>
    tpu.vector_store %arg7[%c0_6, %c0_7], %7 {strides = array<i32>} : memref<240x128xf32, #tpu.memory_space<vmem>>, vector<240x128xf32>,
    %c0_i32_8 = arith.constant 0 : i32
    %9 = arith.cmpi eq, %arg2, %c0_i32_8 : i32
    %10 = arith.extui %9 : i1 to i32
    %c0_i32_9 = arith.constant 0 : i32
    %11 = arith.cmpi ne, %10, %c0_i32_9 : i32
    scf.if %11 {
      %c0_10 = arith.constant 0 : index
      %c0_11 = arith.constant 0 : index
      %12 = vector.load %arg7[%c0_10, %c0_11] : memref<240x128xf32, #tpu.memory_space<vmem>>, vector<240x128xf32>
      %c0_12 = arith.constant 0 : index
      %c0_13 = arith.constant 0 : index
      %13 = vector.load %arg5[%c0_12, %c0_13] : memref<1x128xf32, #tpu.memory_space<vmem>>, vector<1x128xf32>
      %14 = vector.broadcast %13 : vector<1x128xf32> to vector<240x128xf32>
      %15 = arith.mulf %12, %14 : vector<240x128xf32>
      %c0_14 = arith.constant 0 : index
      %c0_15 = arith.constant 0 : index
      %16 = vector.load %arg6[%c0_14, %c0_15] : memref<1x128xf32, #tpu.memory_space<vmem>>, vector<1x128xf32>
      %17 = vector.broadcast %16 : vector<1x128xf32> to vector<240x128xf32>
      %18 = arith.addf %15, %17 : vector<240x128xf32>
      %cst_16 = arith.constant 0.000000e+00 : f32
      %19 = vector.broadcast %cst_16 : f32 to vector<240x128xf32>
      %20 = arith.maximumf %18, %19 : vector<240x128xf32>
      %c0_17 = arith.constant 0 : index
      %c0_18 = arith.constant 0 : index
      %21 = vector.load %arg7[%c0_17, %c0_18] : memref<240x128xf32, #tpu.memory_space<vmem>>, vector<240x128xf32>
      tpu.vector_store %arg7[%c0_17, %c0_18], %20 {strides = array<i32>} : memref<240x128xf32, #tpu.memory_space<vmem>>, vector<240x128xf32>,
    } else {
    }
    return
  }
  func.func @transform_0(%arg0: i32, %arg1: i32, %arg2: i32) -> (i32, i32) {
    %c0_i32 = arith.constant 0 : i32
    return %arg0, %arg2 : i32, i32
  }
  func.func @transform_1(%arg0: i32, %arg1: i32, %arg2: i32) -> (i32, i32) {
    %c0_i32 = arith.constant 0 : i32
    return %arg2, %arg1 : i32, i32
  }
  func.func @transform_2(%arg0: i32, %arg1: i32, %arg2: i32) -> (i32, i32) {
    %c0_i32 = arith.constant 0 : i32
    %c0_i32_0 = arith.constant 0 : i32
    return %c0_i32, %arg1 : i32, i32
  }
  func.func @transform_3(%arg0: i32, %arg1: i32, %arg2: i32) -> (i32, i32) {
    %c0_i32 = arith.constant 0 : i32
    %c0_i32_0 = arith.constant 0 : i32
    return %c0_i32, %arg1 : i32, i32
  }
  func.func @transform_4(%arg0: i32, %arg1: i32, %arg2: i32) -> (i32, i32) {
    %c0_i32 = arith.constant 0 : i32
    return %arg0, %arg1 : i32, i32
  }
}

</mosaic_0001>

<bundles_post_ra>
// kernel: tpu_custom_call.1
= control target key start
LH: loop header
LB: loop body
LE: loop exit
PB: predicated region body
PF: predicated region fallthrough
CT: control target
= control target key end

     0   :  { %9 = vsyncpa [#allocation3], 0  ;;  %s1288_s0 = inlined_call_operand.hbm [shape: bf16[240,256], index: 0, kind: input, shape index: {}]   ;;  %s1289_s1 = inlined_call_operand.hbm [shape: bf16[256,128], index: 1, kind: input, shape index: {}]   ;;  %s1290_s2 = inlined_call_operand.vmem [shape: f32[1,128], index: 2, kind: input, shape index: {}]   ;;  %s1291_s3 = inlined_call_operand.vmem [shape: f32[1,128], index: 3, kind: input, shape index: {}]   ;;  %s1292_s4 = inlined_call_operand.hbm [shape: f32[240,128], index: 4, kind: output, shape index: {}]  }
   0x1   :  { %10 = vsyncpa [#allocation6], 0 }
   0x2   :  { %11 = vsyncpa [#allocation4], 0  ;;  %s16_s17 = sshll.u32 %s1288_s0, 4  ;;  %s1165_s18 = smov [#allocation2]   ;;  %s17_s17 = int_to_ptr.hbm [resolvable:$true] %s16_s17 }
   0x3   :  { %s18_s19 = sshll.u32 %s1165_s18, 4  ;;  %s29_s22 = sshll.u32 %s1289_s1, 4  ;;  %s19_s19 = int_to_ptr.vmem [resolvable:$true] %s18_s19  ;;  %s30_s22 = int_to_ptr.hbm [resolvable:$true] %s29_s22 }
   0x4   :  { %s1166_s23 = smov 128   ;;  %s1167_s24 = smov 8  }
   0x5   :  { %24 = dma.hbm_to_vmem [thread:$0]  %s17_s17, 3840, %s19_s19, [#allocation3], %s1166_s23, %s1166_s23, %s1167_s24  }
   0x6   :  { %s1168_s25 = smov [#allocation5]   ;;  %s1169_s27 = smov 64  }
   0x7   :  { %s31_s26 = sshll.u32 %s1168_s25, 4  ;;  %s1170_s0 = smov 4   ;;  %s32_s26 = int_to_ptr.vmem [resolvable:$true] %s31_s26 }
   0x8   :  { %37 = dma.hbm_to_vmem [thread:$0]  %s30_s22, 2048, %s32_s26, [#allocation6], %s1169_s27, %s1169_s27, %s1170_s0  }
   0x9   :  { %1159 = dma.done.wait [#allocation3], 3840  }
   0xa   :  { %1160 = vsyncadd [#allocation3], 4294963456 }
   0xb   :  { %1161 = dma.done.wait [#allocation6], 2048  }
   0xc   :  { %1162 = vsyncadd [#allocation6], 4294965248  ;;  %v1052_v0 = vld [vmem:[#allocation5 + $0x38] sm:$0xff]  ;;  %v1051_v2 = vld [vmem:[#allocation5 + $0x30] sm:$0xff]  ;;  %s817_s7 = sshll.u32 %s1292_s4, 4  ;;  %s818_s7 = int_to_ptr.hbm [resolvable:$true] %s817_s7 }
   0xd   :  { %v1060_v1 = vld [vmem:[#allocation5 + $0x78] sm:$0xff]  ;;  %422 = vmatpush.bf16.msra.mxu0 %v1052_v0  ;;  %1061 = vmatpush.bf16.msra.mxu2 %v1052_v0  ;;  %v1059_v3 = vld [vmem:[#allocation5 + $0x70] sm:$0xff]  ;;  %v1050_v4 = vld [vmem:[#allocation5 + $0x28] sm:$0xff] }
   0xe   :  { %506 = vmatpush.bf16.msra.mxu1 %v1060_v1  ;;  %1069 = vmatpush.bf16.msra.mxu3 %v1060_v1  ;;  %v1058_v5 = vld [vmem:[#allocation5 + $0x68] sm:$0xff]  ;;  %v1049_v6 = vld [vmem:[#allocation5 + $0x20] sm:$0xff]  ;;  %v1048_v8 = vld [vmem:[#allocation5 + $0x18] sm:$0xff] }
   0xf   :  { %v1057_v7 = vld [vmem:[#allocation5 + $0x60] sm:$0xff]  ;;  %v1056_v9 = vld [vmem:[#allocation5 + $0x58] sm:$0xff]  ;;  %v1047_v10 = vld [vmem:[#allocation5 + $0x10] sm:$0xff] }
  0x10   :  { %v1055_v11 = vld [vmem:[#allocation5 + $0x50] sm:$0xff]  ;;  %v1046_v12 = vld [vmem:[#allocation5 + $0x8] sm:$0xff]  ;;  %v1045_v14 = vld [vmem:[#allocation5] sm:$0xff] }
  0x11   :  { %423 = vmatpush.bf16.msra.mxu0 %v1051_v2  ;;  %1062 = vmatpush.bf16.msra.mxu2 %v1051_v2  ;;  %v1054_v13 = vld [vmem:[#allocation5 + $0x48] sm:$0xff]  ;;  %v1053_v15 = vld [vmem:[#allocation5 + $0x40] sm:$0xff]  ;;  %v833_v16 = vld [vmem:[#allocation2] sm:$0xf] }
  0x12   :  { %507 = vmatpush.bf16.msra.mxu1 %v1059_v3  ;;  %1070 = vmatpush.bf16.msra.mxu3 %v1059_v3  ;;  %v1016_v17 = vld [vmem:[#allocation2 + $0x4] sm:$0xf0]  ;;  %v889_v18 = vld [vmem:[#allocation2 + $0x70] sm:$0xf]  ;;  %v1030_v19 = vld [vmem:[#allocation2 + $0x74] sm:$0xf0] }
  0x13   :  { %v1015_v20 = vld [vmem:[#allocation2 + $0x4] sm:$0xf]  ;;  %v835_v21 = vld [vmem:[#allocation2 + $0x8] sm:$0xf0]  ;;  %v834_v24 = vor.u32 %v1016_v17, %v833_v16  ;;  %v890_v25 = vor.u32 %v1030_v19, %v889_v18  ;;  %v841_v28 = vld [vmem:[#allocation2 + $0x10] sm:$0xf] }
  0x14   :  { %v1031_v22 = vld [vmem:[#allocation2 + $0x84] sm:$0xf]  ;;  %v899_v23 = vld [vmem:[#allocation2 + $0x88] sm:$0xf0]  ;;  %v838_v26 = vor.u32 %v1015_v20, %v835_v21  ;;  %v1018_v29 = vld [vmem:[#allocation2 + $0x14] sm:$0xf0] }
  0x15   :  { %424 = vmatpush.bf16.msra.mxu0 %v1050_v4  ;;  %1063 = vmatpush.bf16.msra.mxu2 %v1050_v4  ;;  %v902_v27 = vor.u32 %v1031_v22, %v899_v23  ;;  %v897_v30 = vld [vmem:[#allocation2 + $0x80] sm:$0xf]  ;;  %v1032_v31 = vld [vmem:[#allocation2 + $0x84] sm:$0xf0]  ;;  %v1017_v32 = vld [vmem:[#allocation2 + $0x14] sm:$0xf]  ;;  %v842_v36 = vor.u32 %v1018_v29, %v841_v28 }
  0x16   :  { %508 = vmatpush.bf16.msra.mxu1 %v1058_v5  ;;  %1071 = vmatpush.bf16.msra.mxu3 %v1058_v5  ;;  %v843_v33 = vld [vmem:[#allocation2 + $0x18] sm:$0xf0]  ;;  %v1033_v34 = vld [vmem:[#allocation2 + $0x94] sm:$0xf]  ;;  %v898_v37 = vor.u32 %v1032_v31, %v897_v30  ;;  %v849_v40 = vld [vmem:[#allocation2 + $0x20] sm:$0xf] }
  0x17   :  { %v907_v35 = vld [vmem:[#allocation2 + $0x98] sm:$0xf0]  ;;  %v846_v38 = vor.u32 %v1017_v32, %v843_v33  ;;  %v1020_v41 = vld [vmem:[#allocation2 + $0x24] sm:$0xf0]  ;;  %v905_v42 = vld [vmem:[#allocation2 + $0x90] sm:$0xf] }
  0x18   :  { %v910_v39 = vor.u32 %v1033_v34, %v907_v35  ;;  %v1034_v43 = vld [vmem:[#allocation2 + $0x94] sm:$0xf0]  ;;  %v1019_v44 = vld [vmem:[#allocation2 + $0x24] sm:$0xf]  ;;  %v851_v45 = vld [vmem:[#allocation2 + $0x28] sm:$0xf0]  ;;  %v850_v48 = vor.u32 %v1020_v41, %v849_v40 }
  0x19   :  { %425 = vmatpush.bf16.msra.mxu0 %v1049_v6  ;;  %1064 = vmatpush.bf16.msra.mxu2 %v1049_v6  ;;  %v1035_v46 = vld [vmem:[#allocation2 + $0xa4] sm:$0xf]  ;;  %v915_v47 = vld [vmem:[#allocation2 + $0xa8] sm:$0xf0]  ;;  %v906_v49 = vor.u32 %v1034_v43, %v905_v42  ;;  %v854_v50 = vor.u32 %v1019_v44, %v851_v45  ;;  %v857_v52 = vld [vmem:[#allocation2 + $0x30] sm:$0xf] }
  0x1a   :  { %509 = vmatpush.bf16.msra.mxu1 %v1057_v7  ;;  %1072 = vmatpush.bf16.msra.mxu3 %v1057_v7  ;;  %v918_v51 = vor.u32 %v1035_v46, %v915_v47  ;;  %v1022_v53 = vld [vmem:[#allocation2 + $0x34] sm:$0xf0]  ;;  %v913_v54 = vld [vmem:[#allocation2 + $0xa0] sm:$0xf]  ;;  %v1036_v55 = vld [vmem:[#allocation2 + $0xa4] sm:$0xf0] }
  0x1b   :  { %v1021_v56 = vld [vmem:[#allocation2 + $0x34] sm:$0xf]  ;;  %v859_v57 = vld [vmem:[#allocation2 + $0x38] sm:$0xf0]  ;;  %v858_v60 = vor.u32 %v1022_v53, %v857_v52  ;;  %v914_v61 = vor.u32 %v1036_v55, %v913_v54  ;;  %v865_v0 = vld [vmem:[#allocation2 + $0x40] sm:$0xf] }
  0x1c   :  { %v1037_v58 = vld [vmem:[#allocation2 + $0xb4] sm:$0xf]  ;;  %v923_v59 = vld [vmem:[#allocation2 + $0xb8] sm:$0xf0]  ;;  %v862_v62 = vor.u32 %v1021_v56, %v859_v57  ;;  %v1024_v1 = vld [vmem:[#allocation2 + $0x44] sm:$0xf0] }
  0x1d   :  { %426 = vmatpush.bf16.msra.mxu0 %v1048_v8  ;;  %1065 = vmatpush.bf16.msra.mxu2 %v1048_v8  ;;  %v926_v63 = vor.u32 %v1037_v58, %v923_v59  ;;  %v921_v2 = vld [vmem:[#allocation2 + $0xb0] sm:$0xf]  ;;  %v1038_v3 = vld [vmem:[#allocation2 + $0xb4] sm:$0xf0]  ;;  %v1023_v4 = vld [vmem:[#allocation2 + $0x44] sm:$0xf]  ;;  %v866_v8 = vor.u32 %v1024_v1, %v865_v0 }
  0x1e   :  { %510 = vmatpush.bf16.msra.mxu1 %v1056_v9  ;;  %1073 = vmatpush.bf16.msra.mxu3 %v1056_v9  ;;  %v867_v5 = vld [vmem:[#allocation2 + $0x48] sm:$0xf0]  ;;  %v1039_v6 = vld [vmem:[#allocation2 + $0xc4] sm:$0xf]  ;;  %v922_v9 = vor.u32 %v1038_v3, %v921_v2  ;;  %v1025_v16 = vld [vmem:[#allocation2 + $0x54] sm:$0xf] }
  0x1f   :  { %v931_v7 = vld [vmem:[#allocation2 + $0xc8] sm:$0xf0]  ;;  %v875_v17 = vld [vmem:[#allocation2 + $0x58] sm:$0xf0]  ;;  %v1041_v18 = vld [vmem:[#allocation2 + $0xd4] sm:$0xf] }
  0x20   :  { %v939_v19 = vld [vmem:[#allocation2 + $0xd8] sm:$0xf0]  ;;  %v878_v22 = vor.u32 %v1025_v16, %v875_v17  ;;  %v1027_v28 = vld [vmem:[#allocation2 + $0x64] sm:$0xf]  ;;  %v883_v29 = vld [vmem:[#allocation2 + $0x68] sm:$0xf0] }
  0x21   :  { %427 = vmatpush.bf16.msra.mxu0 %v1047_v10  ;;  %1066 = vmatpush.bf16.msra.mxu2 %v1047_v10  ;;  %v870_v10 = vor.u32 %v1023_v4, %v867_v5  ;;  %v942_v23 = vor.u32 %v1041_v18, %v939_v19  ;;  %v1043_v30 = vld [vmem:[#allocation2 + $0xe4] sm:$0xf]  ;;  %v947_v31 = vld [vmem:[#allocation2 + $0xe8] sm:$0xf0]  ;;  %v886_v34 = vor.u32 %v1027_v28, %v883_v29  ;;  %v1209_v45 = vld [vmem:[%s1290_s2] ss:$0 sm:$0xff] }
  0x22   :  { %511 = vmatpush.bf16.msra.mxu1 %v1055_v11  ;;  %1074 = vmatpush.bf16.msra.mxu3 %v1055_v11  ;;  %v934_v11 = vor.u32 %v1039_v6, %v931_v7  ;;  %v950_v35 = vor.u32 %v1043_v30, %v947_v31  ;;  %v1214_v46 = vld [vmem:[%s1291_s3] ss:$0 sm:$0xff]  ;;  %s1171_s2 = smov [#allocation7]  }
  0x23   :  { %s815_s3 = sshll.u32 %s1171_s2, 4  ;;  %s816_s3 = int_to_ptr.vmem [resolvable:$true] %s815_s3 }
  0x25   :  { %428 = vmatpush.bf16.msra.mxu0 %v1046_v12  ;;  %1067 = vmatpush.bf16.msra.mxu2 %v1046_v12  ;;  %v873_v12 = vld [vmem:[#allocation2 + $0x50] sm:$0xf] }
  0x26   :  { %512 = vmatpush.bf16.msra.mxu1 %v1054_v13  ;;  %1075 = vmatpush.bf16.msra.mxu3 %v1054_v13  ;;  %v1026_v13 = vld [vmem:[#allocation2 + $0x54] sm:$0xf0] }
  0x27   :  { %v874_v20 = vor.u32 %v1026_v13, %v873_v12 }
  0x29   :  { %429 = vmatpush.bf16.msra.mxu0 %v1045_v14  ;;  %1068 = vmatpush.bf16.msra.mxu2 %v1045_v14  ;;  %v929_v14 = vld [vmem:[#allocation2 + $0xc0] sm:$0xf] }
  0x2a   :  { %513 = vmatpush.bf16.msra.mxu1 %v1053_v15  ;;  %1076 = vmatpush.bf16.msra.mxu3 %v1053_v15  ;;  %v1040_v15 = vld [vmem:[#allocation2 + $0xc4] sm:$0xf0] }
  0x2b   :  { %v930_v21 = vor.u32 %v1040_v15, %v929_v14 }
  0x2c   :  { %430 = vmatmul.bf16.vlgmr.msra.gmra.mxu0 %v834_v24  ;;  %465 = vmatmul.bf16.vlgmr.msra.gmra.mxu2 %v890_v25  ;;  %v881_v24 = vld [vmem:[#allocation2 + $0x60] sm:$0xf]  ;;  %v1028_v25 = vld [vmem:[#allocation2 + $0x64] sm:$0xf0] }
  0x2d   :  { %514 = vmatmul.bf16.vlgmr.msra.gmra.mxu1 %v838_v26  ;;  %554 = vmatmul.bf16.vlgmr.msra.gmra.mxu3 %v902_v27  ;;  %v937_v26 = vld [vmem:[#allocation2 + $0xd0] sm:$0xf]  ;;  %v1042_v27 = vld [vmem:[#allocation2 + $0xd4] sm:$0xf0]  ;;  %v882_v32 = vor.u32 %v1028_v25, %v881_v24 }
  0x2e   :  { %v938_v33 = vor.u32 %v1042_v27, %v937_v26 }
  0x3c   :  { %435 = vmatmul.bf16.gmra.mxu0 %v842_v36  ;;  %470 = vmatmul.bf16.gmra.mxu2 %v898_v37  ;;  %v945_v36 = vld [vmem:[#allocation2 + $0xe0] sm:$0xf]  ;;  %v1044_v37 = vld [vmem:[#allocation2 + $0xe4] sm:$0xf0] }
  0x3d   :  { %519 = vmatmul.bf16.gmra.mxu1 %v846_v38  ;;  %559 = vmatmul.bf16.gmra.mxu3 %v910_v39  ;;  %v1029_v38 = vld [vmem:[#allocation2 + $0x74] sm:$0xf]  ;;  %v891_v39 = vld [vmem:[#allocation2 + $0x78] sm:$0xf0]  ;;  %v946_v40 = vor.u32 %v1044_v37, %v945_v36 }
  0x3e   :  { %v894_v41 = vor.u32 %v1029_v38, %v891_v39 }
  0x4c   :  { %440 = vmatmul.bf16.gmra.mxu0 %v850_v48  ;;  %475 = vmatmul.bf16.gmra.mxu2 %v906_v49 }
  0x4d   :  { %524 = vmatmul.bf16.gmra.mxu1 %v854_v50  ;;  %564 = vmatmul.bf16.gmra.mxu3 %v918_v51 }
  0x5c   :  { %445 = vmatmul.bf16.gmra.mxu0 %v858_v60  ;;  %480 = vmatmul.bf16.gmra.mxu2 %v914_v61 }
  0x5d   :  { %529 = vmatmul.bf16.gmra.mxu1 %v862_v62  ;;  %569 = vmatmul.bf16.gmra.mxu3 %v926_v63 }
  0x6c   :  { %450 = vmatmul.bf16.gmra.mxu0 %v866_v8  ;;  %485 = vmatmul.bf16.gmra.mxu2 %v922_v9 }
  0x6d   :  { %534 = vmatmul.bf16.gmra.mxu1 %v870_v10  ;;  %574 = vmatmul.bf16.gmra.mxu3 %v934_v11 }
  0x7c   :  { %455 = vmatmul.bf16.gmra.mxu0 %v874_v20  ;;  %490 = vmatmul.bf16.gmra.mxu2 %v930_v21 }
  0x7d   :  { %539 = vmatmul.bf16.gmra.mxu1 %v878_v22  ;;  %579 = vmatmul.bf16.gmra.mxu3 %v942_v23 }
  0x8c   :  { %460 = vmatmul.bf16.gmra.mxu0 %v882_v32  ;;  %495 = vmatmul.bf16.gmra.mxu2 %v938_v33 }
  0x8d   :  { %544 = vmatmul.bf16.gmra.mxu1 %v886_v34  ;;  %584 = vmatmul.bf16.gmra.mxu3 %v950_v35 }
  0x9c   :  { %500 = vmatmul.bf16.gmra.mxu2 %v946_v40 }
  0x9d   :  { %549 = vmatmul.bf16.gmra.mxu1 %v894_v41 }
  0xa9   :  { %v431_v42 = vpop.f32.mrf.mxu0 }
  0xaa   :  { %v515_v43 = vpop.f32.mrf.mxu1 }
  0xab   :  { %v516_v44 = vadd.f32 %v515_v43, %v431_v42 }
  0xad   :  { %v687_v47 = vmul.f32 %v1209_v45, %v516_v44 }
  0xaf   :  { %v1217_v48 = vpop.f32.mrf.mxu2  ;;  %v721_v50 = vadd.f32 %v1214_v46, %v687_v47 }
  0xb0   :  { %v555_v49 = vpop.f32.mrf.mxu3 }
  0xb1   :  { %v433_v51 = vpop.f32.mrf.mxu0  ;;  %v751_v53 = vmax.f32 %v721_v50, 0.0 }
  0xb2   :  { %v517_v52 = vpop.f32.mrf.mxu1 }
  0xb3   :  { %v518_v54 = vadd.f32 %v517_v52, %v433_v51  ;;  %781 = vst [vmem:[#allocation7] sm:$0xff] %v751_v53 }
  0xb5   :  { %v688_v55 = vmul.f32 %v1209_v45, %v518_v54 }
  0xb7   :  { %v1221_v56 = vpop.f32.mrf.mxu2  ;;  %v722_v58 = vadd.f32 %v1214_v46, %v688_v55 }
  0xb8   :  { %v557_v57 = vpop.f32.mrf.mxu3 }
  0xb9   :  { %v436_v59 = vpop.f32.mrf.mxu0  ;;  %v752_v61 = vmax.f32 %v722_v58, 0.0 }
  0xba   :  { %v520_v60 = vpop.f32.mrf.mxu1 }
  0xbb   :  { %v521_v62 = vadd.f32 %v520_v60, %v436_v59  ;;  %782 = vst [vmem:[#allocation7 + $0x8] sm:$0xff] %v752_v61 }
  0xbd   :  { %v689_v63 = vmul.f32 %v1209_v45, %v521_v62 }
  0xbf   :  { %v471_v0 = vpop.f32.mrf.mxu2  ;;  %v723_v3 = vadd.f32 %v1214_v46, %v689_v63 }
  0xc0   :  { %v556_v1 = vadd.f32 %v555_v49, %v471_v0  ;;  %v560_v2 = vpop.f32.mrf.mxu3 }
  0xc1   :  { %v438_v4 = vpop.f32.mrf.mxu0  ;;  %v753_v6 = vmax.f32 %v723_v3, 0.0 }
  0xc2   :  { %v522_v5 = vpop.f32.mrf.mxu1  ;;  %v703_v8 = vmul.f32 %v1209_v45, %v556_v1 }
  0xc3   :  { %v523_v7 = vadd.f32 %v522_v5, %v438_v4  ;;  %783 = vst [vmem:[#allocation7 + $0x10] sm:$0xff] %v753_v6 }
  0xc4   :  { %v737_v9 = vadd.f32 %v1214_v46, %v703_v8 }
  0xc5   :  { %v690_v10 = vmul.f32 %v1209_v45, %v523_v7 }
  0xc6   :  { %v767_v12 = vmax.f32 %v737_v9, 0.0 }
  0xc7   :  { %v473_v11 = vpop.f32.mrf.mxu2  ;;  %v724_v15 = vadd.f32 %v1214_v46, %v690_v10 }
  0xc8   :  { %v558_v13 = vadd.f32 %v557_v57, %v473_v11  ;;  %v562_v14 = vpop.f32.mrf.mxu3  ;;  %797 = vst [vmem:[#allocation7 + $0x80] sm:$0xff] %v767_v12 }
  0xc9   :  { %v441_v16 = vpop.f32.mrf.mxu0  ;;  %v754_v18 = vmax.f32 %v724_v15, 0.0 }
  0xca   :  { %v525_v17 = vpop.f32.mrf.mxu1  ;;  %v704_v20 = vmul.f32 %v1209_v45, %v558_v13 }
  0xcb   :  { %v526_v19 = vadd.f32 %v525_v17, %v441_v16  ;;  %784 = vst [vmem:[#allocation7 + $0x18] sm:$0xff] %v754_v18 }
  0xcc   :  { %v738_v21 = vadd.f32 %v1214_v46, %v704_v20 }
  0xcd   :  { %v691_v22 = vmul.f32 %v1209_v45, %v526_v19 }
  0xce   :  { %v768_v24 = vmax.f32 %v738_v21, 0.0 }
  0xcf   :  { %v476_v23 = vpop.f32.mrf.mxu2  ;;  %v725_v27 = vadd.f32 %v1214_v46, %v691_v22 }
  0xd0   :  { %v561_v25 = vadd.f32 %v560_v2, %v476_v23  ;;  %v565_v26 = vpop.f32.mrf.mxu3  ;;  %798 = vst [vmem:[#allocation7 + $0x88] sm:$0xff] %v768_v24 }
  0xd1   :  { %v443_v28 = vpop.f32.mrf.mxu0  ;;  %v755_v30 = vmax.f32 %v725_v27, 0.0 }
  0xd2   :  { %v527_v29 = vpop.f32.mrf.mxu1  ;;  %v705_v32 = vmul.f32 %v1209_v45, %v561_v25 }
  0xd3   :  { %v528_v31 = vadd.f32 %v527_v29, %v443_v28  ;;  %785 = vst [vmem:[#allocation7 + $0x20] sm:$0xff] %v755_v30 }
  0xd4   :  { %v739_v33 = vadd.f32 %v1214_v46, %v705_v32 }
  0xd5   :  { %v692_v34 = vmul.f32 %v1209_v45, %v528_v31 }
  0xd6   :  { %v769_v36 = vmax.f32 %v739_v33, 0.0 }
  0xd7   :  { %v478_v35 = vpop.f32.mrf.mxu2  ;;  %v726_v39 = vadd.f32 %v1214_v46, %v692_v34 }
  0xd8   :  { %v563_v37 = vadd.f32 %v562_v14, %v478_v35  ;;  %v567_v38 = vpop.f32.mrf.mxu3  ;;  %799 = vst [vmem:[#allocation7 + $0x90] sm:$0xff] %v769_v36 }
  0xd9   :  { %v446_v40 = vpop.f32.mrf.mxu0  ;;  %v756_v42 = vmax.f32 %v726_v39, 0.0 }
  0xda   :  { %v530_v41 = vpop.f32.mrf.mxu1  ;;  %v706_v44 = vmul.f32 %v1209_v45, %v563_v37 }
  0xdb   :  { %v531_v43 = vadd.f32 %v530_v41, %v446_v40  ;;  %786 = vst [vmem:[#allocation7 + $0x28] sm:$0xff] %v756_v42 }
  0xdc   :  { %v740_v47 = vadd.f32 %v1214_v46, %v706_v44 }
  0xdd   :  { %v693_v49 = vmul.f32 %v1209_v45, %v531_v43 }
  0xde   :  { %v770_v51 = vmax.f32 %v740_v47, 0.0 }
  0xdf   :  { %v481_v50 = vpop.f32.mrf.mxu2  ;;  %v727_v53 = vadd.f32 %v1214_v46, %v693_v49 }
  0xe0   :  { %v566_v52 = vadd.f32 %v565_v26, %v481_v50  ;;  %v570_v55 = vpop.f32.mrf.mxu3  ;;  %800 = vst [vmem:[#allocation7 + $0x98] sm:$0xff] %v770_v51 }
  0xe1   :  { %v448_v54 = vpop.f32.mrf.mxu0  ;;  %v757_v58 = vmax.f32 %v727_v53, 0.0 }
  0xe2   :  { %v532_v57 = vpop.f32.mrf.mxu1  ;;  %v707_v60 = vmul.f32 %v1209_v45, %v566_v52 }
  0xe3   :  { %v533_v59 = vadd.f32 %v532_v57, %v448_v54  ;;  %787 = vst [vmem:[#allocation7 + $0x30] sm:$0xff] %v757_v58 }
  0xe4   :  { %v741_v61 = vadd.f32 %v1214_v46, %v707_v60 }
  0xe5   :  { %v694_v62 = vmul.f32 %v1209_v45, %v533_v59 }
  0xe6   :  { %v771_v0 = vmax.f32 %v741_v61, 0.0 }
  0xe7   :  { %v483_v63 = vpop.f32.mrf.mxu2  ;;  %v728_v2 = vadd.f32 %v1214_v46, %v694_v62 }
  0xe8   :  { %v568_v1 = vadd.f32 %v567_v38, %v483_v63  ;;  %801 = vst [vmem:[#allocation7 + $0xa0] sm:$0xff] %v771_v0  ;;  %v572_v7 = vpop.f32.mrf.mxu3 }
  0xe9   :  { %v451_v3 = vpop.f32.mrf.mxu0  ;;  %v758_v5 = vmax.f32 %v728_v2, 0.0 }
  0xea   :  { %v535_v4 = vpop.f32.mrf.mxu1  ;;  %v708_v8 = vmul.f32 %v1209_v45, %v568_v1 }
  0xeb   :  { %v536_v6 = vadd.f32 %v535_v4, %v451_v3  ;;  %788 = vst [vmem:[#allocation7 + $0x38] sm:$0xff] %v758_v5 }
  0xec   :  { %v742_v9 = vadd.f32 %v1214_v46, %v708_v8 }
  0xed   :  { %v695_v10 = vmul.f32 %v1209_v45, %v536_v6 }
  0xee   :  { %v772_v12 = vmax.f32 %v742_v9, 0.0 }
  0xef   :  { %v486_v11 = vpop.f32.mrf.mxu2  ;;  %v729_v14 = vadd.f32 %v1214_v46, %v695_v10 }
  0xf0   :  { %v571_v13 = vadd.f32 %v570_v55, %v486_v11  ;;  %802 = vst [vmem:[#allocation7 + $0xa8] sm:$0xff] %v772_v12  ;;  %v575_v20 = vpop.f32.mrf.mxu3 }
  0xf1   :  { %v453_v15 = vpop.f32.mrf.mxu0  ;;  %v759_v17 = vmax.f32 %v729_v14, 0.0 }
  0xf2   :  { %v537_v16 = vpop.f32.mrf.mxu1  ;;  %v709_v19 = vmul.f32 %v1209_v45, %v571_v13 }
  0xf3   :  { %v538_v18 = vadd.f32 %v537_v16, %v453_v15  ;;  %789 = vst [vmem:[#allocation7 + $0x40] sm:$0xff] %v759_v17 }
  0xf4   :  { %v743_v21 = vadd.f32 %v1214_v46, %v709_v19 }
  0xf5   :  { %v696_v22 = vmul.f32 %v1209_v45, %v538_v18 }
  0xf6   :  { %v773_v24 = vmax.f32 %v743_v21, 0.0 }
  0xf7   :  { %v488_v23 = vpop.f32.mrf.mxu2  ;;  %v730_v26 = vadd.f32 %v1214_v46, %v696_v22 }
  0xf8   :  { %v573_v25 = vadd.f32 %v572_v7, %v488_v23  ;;  %803 = vst [vmem:[#allocation7 + $0xb0] sm:$0xff] %v773_v24  ;;  %v577_v35 = vpop.f32.mrf.mxu3 }
  0xf9   :  { %v456_v27 = vpop.f32.mrf.mxu0  ;;  %v760_v29 = vmax.f32 %v730_v26, 0.0 }
  0xfa   :  { %v540_v28 = vpop.f32.mrf.mxu1  ;;  %v710_v31 = vmul.f32 %v1209_v45, %v573_v25 }
  0xfb   :  { %v541_v30 = vadd.f32 %v540_v28, %v456_v27  ;;  %790 = vst [vmem:[#allocation7 + $0x48] sm:$0xff] %v760_v29 }
  0xfc   :  { %v744_v32 = vadd.f32 %v1214_v46, %v710_v31 }
  0xfd   :  { %v697_v33 = vmul.f32 %v1209_v45, %v541_v30 }
  0xfe   :  { %v774_v36 = vmax.f32 %v744_v32, 0.0 }
  0xff   :  { %v491_v34 = vpop.f32.mrf.mxu2  ;;  %v731_v38 = vadd.f32 %v1214_v46, %v697_v33 }
 0x100   :  { %v576_v37 = vadd.f32 %v575_v20, %v491_v34  ;;  %804 = vst [vmem:[#allocation7 + $0xb8] sm:$0xff] %v774_v36  ;;  %v580_v53 = vpop.f32.mrf.mxu3 }
 0x101   :  { %v458_v39 = vpop.f32.mrf.mxu0  ;;  %v761_v41 = vmax.f32 %v731_v38, 0.0 }
 0x102   :  { %v542_v40 = vpop.f32.mrf.mxu1  ;;  %v711_v43 = vmul.f32 %v1209_v45, %v576_v37 }
 0x103   :  { %v543_v42 = vadd.f32 %v542_v40, %v458_v39  ;;  %791 = vst [vmem:[#allocation7 + $0x50] sm:$0xff] %v761_v41 }
 0x104   :  { %v745_v44 = vadd.f32 %v1214_v46, %v711_v43 }
 0x105   :  { %v698_v47 = vmul.f32 %v1209_v45, %v543_v42 }
 0x106   :  { %v775_v50 = vmax.f32 %v745_v44, 0.0 }
 0x107   :  { %v493_v49 = vpop.f32.mrf.mxu2  ;;  %v732_v52 = vadd.f32 %v1214_v46, %v698_v47 }
 0x108   :  { %v578_v51 = vadd.f32 %v577_v35, %v493_v49  ;;  %805 = vst [vmem:[#allocation7 + $0xc0] sm:$0xff] %v775_v50  ;;  %v582_v5 = vpop.f32.mrf.mxu3 }
 0x109   :  { %v461_v54 = vpop.f32.mrf.mxu0  ;;  %v762_v57 = vmax.f32 %v732_v52, 0.0 }
 0x10a   :  { %v545_v55 = vpop.f32.mrf.mxu1  ;;  %v712_v59 = vmul.f32 %v1209_v45, %v578_v51 }
 0x10b   :  { %v546_v58 = vadd.f32 %v545_v55, %v461_v54  ;;  %792 = vst [vmem:[#allocation7 + $0x58] sm:$0xff] %v762_v57 }
 0x10c   :  { %v746_v60 = vadd.f32 %v1214_v46, %v712_v59 }
 0x10d   :  { %v699_v61 = vmul.f32 %v1209_v45, %v546_v58 }
 0x10e   :  { %v776_v63 = vmax.f32 %v746_v60, 0.0 }
 0x10f   :  { %v496_v62 = vpop.f32.mrf.mxu2  ;;  %v733_v1 = vadd.f32 %v1214_v46, %v699_v61 }
 0x110   :  { %v581_v0 = vadd.f32 %v580_v53, %v496_v62  ;;  %806 = vst [vmem:[#allocation7 + $0xc8] sm:$0xff] %v776_v63  ;;  %v585_v18 = vpop.f32.mrf.mxu3 }
 0x111   :  { %v463_v2 = vpop.f32.mrf.mxu0  ;;  %v763_v4 = vmax.f32 %v733_v1, 0.0 }
 0x112   :  { %v547_v3 = vpop.f32.mrf.mxu1  ;;  %v713_v7 = vmul.f32 %v1209_v45, %v581_v0 }
 0x113   :  { %v548_v6 = vadd.f32 %v547_v3, %v463_v2  ;;  %793 = vst [vmem:[#allocation7 + $0x60] sm:$0xff] %v763_v4 }
 0x114   :  { %v747_v8 = vadd.f32 %v1214_v46, %v713_v7 }
 0x115   :  { %v700_v9 = vmul.f32 %v1209_v45, %v548_v6 }
 0x116   :  { %v777_v11 = vmax.f32 %v747_v8, 0.0 }
 0x117   :  { %v498_v10 = vpop.f32.mrf.mxu2  ;;  %v734_v13 = vadd.f32 %v1214_v46, %v700_v9 }
 0x118   :  { %v583_v12 = vadd.f32 %v582_v5, %v498_v10  ;;  %807 = vst [vmem:[#allocation7 + $0xd0] sm:$0xff] %v777_v11  ;;  %v587_v29 = vpop.f32.mrf.mxu3 }
 0x119   :  { %v764_v15 = vmax.f32 %v734_v13, 0.0 }
 0x11a   :  { %v550_v14 = vpop.f32.mrf.mxu1  ;;  %v714_v17 = vmul.f32 %v1209_v45, %v583_v12 }
 0x11b   :  { %v551_v16 = vadd.f32 %v550_v14, %v1217_v48  ;;  %794 = vst [vmem:[#allocation7 + $0x68] sm:$0xff] %v764_v15 }
 0x11c   :  { %v748_v19 = vadd.f32 %v1214_v46, %v714_v17 }
 0x11d   :  { %v701_v20 = vmul.f32 %v1209_v45, %v551_v16 }
 0x11e   :  { %v778_v22 = vmax.f32 %v748_v19, 0.0 }
 0x11f   :  { %v501_v21 = vpop.f32.mrf.mxu2  ;;  %v735_v24 = vadd.f32 %v1214_v46, %v701_v20 }
 0x120   :  { %v586_v23 = vadd.f32 %v585_v18, %v501_v21  ;;  %808 = vst [vmem:[#allocation7 + $0xd8] sm:$0xff] %v778_v22 }
 0x121   :  { %v765_v26 = vmax.f32 %v735_v24, 0.0 }
 0x122   :  { %v552_v25 = vpop.f32.mrf.mxu1  ;;  %v715_v48 = vmul.f32 %v1209_v45, %v586_v23 }
 0x123   :  { %v553_v27 = vadd.f32 %v552_v25, %v1221_v56  ;;  %795 = vst [vmem:[#allocation7 + $0x70] sm:$0xff] %v765_v26 }
 0x124   :  { %v749_v28 = vadd.f32 %v1214_v46, %v715_v48 }
 0x125   :  { %v702_v30 = vmul.f32 %v1209_v45, %v553_v27 }
 0x126   :  { %v779_v32 = vmax.f32 %v749_v28, 0.0 }
 0x127   :  { %v503_v31 = vpop.f32.mrf.mxu2  ;;  %v736_v34 = vadd.f32 %v1214_v46, %v702_v30 }
 0x128   :  { %v588_v33 = vadd.f32 %v587_v29, %v503_v31  ;;  %809 = vst [vmem:[#allocation7 + $0xe0] sm:$0xff] %v779_v32 }
 0x129   :  { %v766_v35 = vmax.f32 %v736_v34, 0.0 }
 0x12a   :  { %v716_v36 = vmul.f32 %v1209_v45, %v588_v33 }
 0x12b   :  { %796 = vst [vmem:[#allocation7 + $0x78] sm:$0xff] %v766_v35 }
 0x12c   :  { %v750_v56 = vadd.f32 %v1214_v46, %v716_v36 }
 0x12e   :  { %v780_v37 = vmax.f32 %v750_v56, 0.0 }
 0x130   :  { %810 = vst [vmem:[#allocation7 + $0xe8] sm:$0xff] %v780_v37 }
 0x131   :  { %823 = dma.vmem_to_hbm [thread:$0]  %s816_s3, 3840, %s818_s7, [#allocation4], %s1166_s23, %s1166_s23, %s1167_s24  }
 0x132   :  { %1163 = dma.done.wait [#allocation4], 3840  }
 0x133   :  { %1164 = vsyncadd [#allocation4], 4294963456 }
 0x134   :  { %828 = vsyncpa [#allocation3], 1 }
 0x135   :  { %829 = vsyncpa [#allocation6], 1 }
 0x136   :  { %830 = vsyncpa [#allocation4], 1 }

</bundles_post_ra>
